<compile_context>
chip_gen: v5e
topology: v5e:2x2
jax: 0.10.0
libtpu: 0.0.40
codegen_flags: <defaults>
</compile_context>

<pallas_src>
import functools

import jax
import jax.numpy as jnp
from jax.experimental import pallas as pl
from jax.experimental.pallas import tpu as pltpu


# ----------------------------------------------------------------------------
# helpers
# ----------------------------------------------------------------------------
def _round_up(x, m):
    return (x + m - 1) // m * m


def _cdiv(a, b):
    return (a + b - 1) // b


def _max_tile_rows(nt, ntp, nfd, need_kpad, need_mpad, budget_bytes):
    """Max spatial rows (of 128 lanes each) per tile for a VMEM budget."""
    lane_row_bytes = 128 * 4                        # one (row, 128) f32 slice
    per_row = lane_row_bytes * (
        2 * (2 * nt) * 2                            # k + m inputs, double-buffered
        + 2 * (nfd * 2 * nt)                        # output slab, double-buffered
        + (2 * ntp if need_kpad else 0)             # k halo scratch
        + (2 * ntp if need_mpad else 0)             # mask halo scratch
        + 12 * nt                                   # live temporaries (k0, m0, acc, cnt, res, out)
    )
    return max(8, budget_bytes // per_row)


def _select_row_tiling(srows, max_rows, min_grid):
    """Pick (tile_rows, grid_s, padded_rows); tile_rows is a multiple of 8 or
    the full row count, and padding is bounded (no round_up(S, tile))."""
    max_rows = max(8, max_rows)
    if srows <= max_rows and min_grid <= 1:
        return srows, 1, srows                      # single full-extent tile
    grid_s = max(min_grid, _cdiv(srows, max_rows))
    if srows % 8 == 0:
        # Prefer an exact tiling: a multiple-of-8 tile that divides srows.
        g = grid_s
        while g * 8 <= srows:
            if srows % g == 0 and (srows // g) % 8 == 0:
                return srows // g, g, srows
            g += 1
    tile_cap = max(8, (max_rows // 8) * 8)
    tile = min(_round_up(_cdiv(srows, grid_s), 8), tile_cap)
    grid_s = _cdiv(srows, tile)
    return tile, grid_s, grid_s * tile


# ----------------------------------------------------------------------------
# Pallas kernel: prefix-accumulated neighbour averaging + data consistency
# ----------------------------------------------------------------------------
def _make_kavg_kernel(frame_dist, divide_by_n, clipped, nt, max_d):
    frame_dist = tuple(int(f) for f in frame_dist)
    fd_to_idx = {}
    for i, fd in enumerate(frame_dist):
        fd_to_idx.setdefault(fd, []).append(i)

    need_kpad = max_d > 0
    need_mpad = (max_d > 0) and (not divide_by_n)

    def kernel(k_ref, m_ref, o_ref, *scratch):
        # k_ref / m_ref : (2, nt, rows, 128)  unpadded k-space / mask block
        # o_ref         : (nfd, 2, nt, rows, 128) output slab (all channels)
        # scratch       : optional (2, nt+2*max_d, rows, 128) halo buffers
        kpad_ref = scratch[0] if need_kpad else None
        mpad_ref = scratch[1] if need_mpad else None

        k0 = k_ref[...]
        m0 = m_ref[...]

        # Build the temporal halo in VMEM (no wrapper-side HBM pad pass).
        def _fill(pad_ref, src_ref, src_val):
            pad_ref[:, max_d:max_d + nt] = src_val
            if clipped:
                halo = jnp.zeros((2, max_d) + src_val.shape[2:], jnp.float32)
                pad_ref[:, :max_d] = halo
                pad_ref[:, max_d + nt:] = halo
            else:  # circular boundary: copy wrapped frames
                pad_ref[:, :max_d] = src_ref[:, nt - max_d:nt]
                pad_ref[:, max_d + nt:] = src_ref[:, :max_d]

        if need_kpad:
            _fill(kpad_ref, k_ref, k0)
        if need_mpad:
            _fill(mpad_ref, m_ref, m0)

        if divide_by_n and clipped and max_d > 0:
            # Per-timestep clipped window size; tiny (1, nt, 1, 1) tensor.
            t_idx = jax.lax.broadcasted_iota(jnp.int32, (1, nt, 1, 1), 1)

        def emit(r, acc, cnt):
            if divide_by_n:
                if clipped and r > 0:
                    c = (jnp.minimum(t_idx + r, nt - 1)
                         - jnp.maximum(t_idx - r, 0) + 1).astype(jnp.float32)
                    res = acc * (1.0 / c)                 # tiny tensor, broadcasts
                else:
                    res = acc * (1.0 / float(2 * r + 1))  # constant window size
            else:
                if r == 0:
                    res = acc                             # clamp(count,1) == 1 exactly
                else:
                    c = jnp.maximum(cnt, 1.0)
                    inv = pl.reciprocal(c, approx=True)   # EUP slot
                    inv = inv * (2.0 - c * inv)           # Newton step 1
                    inv = inv * (2.0 - c * inv)           # Newton step 2 (keeps 1e-5 tol)
                    res = acc * inv
            # data consistency: keep originally sampled k-space lines
            out = res + m0 * (k0 - res)
            for idx in fd_to_idx[r]:
                o_ref[idx] = out

        # One prefix pass over the temporal radius produces all frame_dist
        # channels; every shift is an aligned major-axis slice of the halo
        # scratch (no concats, no sublane retiling).
        acc = k0
        cnt = None if divide_by_n else m0
        if 0 in fd_to_idx:
            emit(0, acc, cnt)
        for r in range(1, max_d + 1):
            lo = max_d - r
            hi = max_d + r
            acc = acc + kpad_ref[:, lo:lo + nt] + kpad_ref[:, hi:hi + nt]
            if not divide_by_n:
                cnt = cnt + mpad_ref[:, lo:lo + nt] + mpad_ref[:, hi:hi + nt]
            if r in fd_to_idx:
                emit(r, acc, cnt)

    return kernel, need_kpad, need_mpad


def kavg_pallas(k, m, frame_dist, divide_by_n, clipped=True, *,
                vmem_limit_bytes=48 * 1024 * 1024):
    """k, m: (n, 2, nt, S) float32 -> (n, len(frame_dist), 2, nt, S) float32."""
    n, two, nt, S = k.shape
    assert two == 2
    nfd = len(frame_dist)
    max_d = int(max(frame_dist))
    ntp = nt + 2 * max_d
    if (not clipped) and max_d > nt:
        raise ValueError("circular (clipped=False) averaging requires max(frame_dist) <= nt")

    # ---- lanes -> (rows, 128): time becomes a non-tiled major axis.
    S128 = _round_up(S, 128)
    if S128 != S:
        k = jnp.pad(k, ((0, 0), (0, 0), (0, 0), (0, S128 - S)))
        m = jnp.pad(m, ((0, 0), (0, 0), (0, 0), (0, S128 - S)))
    srows = S128 // 128
    k = k.reshape(n, 2, nt, srows, 128)
    m = m.reshape(n, 2, nt, srows, 128)

    kernel, need_kpad, need_mpad = _make_kavg_kernel(
        frame_dist, divide_by_n, clipped, nt, max_d)

    # ---- spatial-row tiling from a portable VMEM budget (<= ~80% of limit).
    budget = int(vmem_limit_bytes * 0.8)
    max_rows = _max_tile_rows(nt, ntp, nfd, need_kpad, need_mpad, budget)
    min_grid = 2 if (n == 1 and srows >= 16) else 1     # keep both v7x cores busy
    tile_rows, grid_s, srows_p = _select_row_tiling(srows, max_rows, min_grid)
    if srows_p != srows:
        k = jnp.pad(k, ((0, 0), (0, 0), (0, 0), (0, srows_p - srows), (0, 0)))
        m = jnp.pad(m, ((0, 0), (0, 0), (0, 0), (0, srows_p - srows), (0, 0)))

    scratch_shapes = []
    if need_kpad:
        scratch_shapes.append(pltpu.VMEM((2, ntp, tile_rows, 128), jnp.float32))
    if need_mpad:
        scratch_shapes.append(pltpu.VMEM((2, ntp, tile_rows, 128), jnp.float32))

    # ---- cost estimate so XLA can overlap the surrounding FFT HLOs.
    elems_in = 2 * nt * n * srows_p * 128               # one input array
    cost = pl.CostEstimate(
        flops=int(elems_in * (4 * max_d + 5 * nfd)),
        transcendentals=0 if divide_by_n else int(nfd * elems_in),
        bytes_accessed=int(4 * (2 * elems_in + nfd * elems_in)),
    )

    out = pl.pallas_call(
        kernel,
        out_shape=jax.ShapeDtypeStruct((n, nfd, 2, nt, srows_p, 128), jnp.float32),
        grid_spec=pltpu.PrefetchScalarGridSpec(
            num_scalar_prefetch=0,
            grid=(n, grid_s),
            in_specs=[
                pl.BlockSpec((None, 2, nt, tile_rows, 128),
                             lambda b, s: (b, 0, 0, s, 0)),
                pl.BlockSpec((None, 2, nt, tile_rows, 128),
                             lambda b, s: (b, 0, 0, s, 0)),
            ],
            out_specs=pl.BlockSpec((None, nfd, 2, nt, tile_rows, 128),
                                   lambda b, s: (b, 0, 0, 0, s, 0)),
            scratch_shapes=scratch_shapes,
        ),
        compiler_params=pltpu.CompilerParams(
            dimension_semantics=("parallel", "parallel"),
            vmem_limit_bytes=int(vmem_limit_bytes),
        ),
        cost_estimate=cost,
    )(k, m)

    out = out.reshape(n, nfd, 2, nt, srows_p * 128)
    if srows_p * 128 != S:
        out = out[..., :S]
    return out


# ----------------------------------------------------------------------------
# Full forward (matches AveragingInKspace.perform)
# ----------------------------------------------------------------------------
def averaging_in_kspace(x, mask, frame_dist, divide_by_n=False, clipped=True,
                        norm="ortho"):
    """
    x, mask : (n, 2, nx, ny, nt) float32
    returns : (n, 2*len(frame_dist), nx, ny, nt) float32
    """
    assert 0 in frame_dist, "There suppose to be a 0 in frame_dist!"
    n, _, nx, ny, nt = x.shape
    nfd = len(frame_dist)
    norm_str = "ortho" if norm == "ortho" else "backward"

    # image -> k-space, layout (n, 2, nt, nx*ny) (spatial flattened to lanes)
    xp = jnp.transpose(x, (0, 4, 2, 3, 1))                          # (n,nt,nx,ny,2)
    kc = jnp.fft.fft2(xp[..., 0] + 1j * xp[..., 1], norm=norm_str)  # (n,nt,nx,ny)
    kf = jnp.stack([jnp.real(kc), jnp.imag(kc)], axis=1)
    kf = kf.reshape(n, 2, nt, nx * ny).astype(jnp.float32)
    mf = jnp.transpose(mask, (0, 1, 4, 2, 3))
    mf = mf.reshape(n, 2, nt, nx * ny).astype(jnp.float32)

    out = kavg_pallas(kf, mf, frame_dist, divide_by_n, clipped)     # (n,nfd,2,nt,S)
    out = out.reshape(n, nfd, 2, nt, nx, ny)

    # back to image space
    # TODO(synk): the final transpose that moves nt last is a full HBM pass;
    # could be folded into the ifft axes choice if it shows up in profiles.
    oc = out[:, :, 0] + 1j * out[:, :, 1]                           # (n,nfd,nt,nx,ny)
    xr = jnp.fft.ifft2(oc, norm=norm_str)
    xr = jnp.stack([jnp.real(xr), jnp.imag(xr)], axis=2)            # (n,nfd,2,nt,nx,ny)
    xr = jnp.transpose(xr, (0, 1, 2, 4, 5, 3))                      # (n,nfd,2,nx,ny,nt)
    return xr.reshape(n, nfd * 2, nx, ny, nt)


# ----------------------------------------------------------------------------
# Pure-JAX reference for the Pallas portion (sanity check)
# ----------------------------------------------------------------------------
def _shift_zero(a, d):
    nt = a.shape[2]
    if d == 0:
        return a
    if d > 0:
        pad = jnp.zeros(a.shape[:2] + (d,) + a.shape[3:], a.dtype)
        return jnp.concatenate([a[:, :, d:], pad], axis=2)
    pad = jnp.zeros(a.shape[:2] + (-d,) + a.shape[3:], a.dtype)
    return jnp.concatenate([pad, a[:, :, : nt + d]], axis=2)


def kavg_ref(k, m, frame_dist, divide_by_n, clipped=True):
    outs = []
    src = jnp.ones_like(m) if divide_by_n else m
    for fd in frame_dist:
        acc = jnp.zeros_like(k)
        cnt = jnp.zeros_like(k)
        for d in range(-fd, fd + 1):
            if clipped:
                acc = acc + _shift_zero(k, d)
                cnt = cnt + _shift_zero(src, d)
            else:
                acc = acc + jnp.roll(k, -d, axis=2)
                cnt = cnt + jnp.roll(src, -d, axis=2)
        res = acc / jnp.maximum(cnt, 1.0)
        outs.append((1.0 - m) * res + m * k)
    return jnp.stack(outs, axis=1)


# ----------------------------------------------------------------------------
if __name__ == "__main__":
    n, nx, ny, nt = 2, 16, 16, 8
    key = jax.random.PRNGKey(0)
    kx, km = jax.random.split(key)
    x = jax.random.normal(kx, (n, 2, nx, ny, nt), dtype=jnp.float32)
    mask = (jax.random.uniform(km, (n, 2, nx, ny, nt)) > 0.5).astype(jnp.float32)

    frame_dist = [0, 1]
    fwd = jax.jit(functools.partial(
        averaging_in_kspace,
        frame_dist=frame_dist,
        divide_by_n=False,
        clipped=True,
        norm="ortho",
    ))
    out = jax.block_until_ready(fwd(x, mask))
    assert out.shape == (n, 2 * len(frame_dist), nx, ny, nt), out.shape

    # k-space inputs for checking the Pallas hot path against a pure-JAX ref
    xp = jnp.transpose(x, (0, 4, 2, 3, 1))
    kc = jnp.fft.fft2(xp[..., 0] + 1j * xp[..., 1], norm="ortho")
    kf = jnp.stack([jnp.real(kc), jnp.imag(kc)], axis=1)
    kf = kf.reshape(n, 2, nt, nx * ny).astype(jnp.float32)
    mf = jnp.transpose(mask, (0, 1, 4, 2, 3)).reshape(n, 2, nt, nx * ny)
    mf = mf.astype(jnp.float32)

    configs = [
        ([0, 1], False, True),    # data-dependent counts, clipped boundary
        ([2, 0], True, True),     # clipped-window counts, unsorted frame_dist
        ([0, 1], False, False),   # circular boundary, data-dependent counts
        ([0, 3], True, False),    # circular boundary, constant counts
    ]
    for fd_list, dbn, clip in configs:
        got = jax.block_until_ready(kavg_pallas(kf, mf, fd_list, dbn, clip))
        want = kavg_ref(kf, mf, fd_list, dbn, clip)
        err = float(jnp.max(jnp.abs(got - want)))
        assert err < 1e-5, (fd_list, dbn, clip, err)

    # lane count not a multiple of 128 (exercises lane padding path)
    got = jax.block_until_ready(
        kavg_pallas(kf[..., :200], mf[..., :200], [0, 1], False, True))
    want = kavg_ref(kf[..., :200], mf[..., :200], [0, 1], False, True)
    assert float(jnp.max(jnp.abs(got - want))) < 1e-5

    # single-batch, larger spatial extent: exercises the multi-tile spatial
    # grid (>= 2 parallel steps) and the row-padding fallback.
    kb1, kb2 = jax.random.split(km)
    k_big = jax.random.normal(kb1, (1, 2, 8, 2176), dtype=jnp.float32)
    m_big = (jax.random.uniform(kb2, (1, 2, 8, 2176)) > 0.5).astype(jnp.float32)
    got = jax.block_until_ready(kavg_pallas(k_big, m_big, [0, 2], False, True))
    want = kavg_ref(k_big, m_big, [0, 2], False, True)
    assert float(jnp.max(jnp.abs(got - want))) < 1e-5

    print("KERNEL_OK")
</pallas_src>

<mosaic_0001>
module attributes {stable_mosaic.version = 11 : i64} {
  func.func @kernel(%arg0: i32, %arg1: i32, %arg2: memref<1x2x8x2x128xf32, #tpu.memory_space<vmem>>, %arg3: memref<1x2x8x2x128xf32, #tpu.memory_space<vmem>>, %arg4: memref<1x2x2x8x2x128xf32, #tpu.memory_space<vmem>>, %arg5: memref<2x10x2x128xf32, #tpu.memory_space<vmem>>, %arg6: memref<2x10x2x128xf32, #tpu.memory_space<vmem>>) attributes {dimension_semantics = [#tpu.dimension_semantics<parallel>, #tpu.dimension_semantics<parallel>], iteration_bounds = array<i64: 2, 1>, scalar_prefetch = 0 : i64, scratch_operands = 2 : i64, tpu.core_type = #tpu.core_type<tc>, window_params = [{transform_indices = @transform_0, window_bounds = array<i64: 1, 2, 8, 2, 128>}, {transform_indices = @transform_1, window_bounds = array<i64: 1, 2, 8, 2, 128>}, {transform_indices = @transform_2, window_bounds = array<i64: 1, 2, 2, 8, 2, 128>}]} {
    %c0 = arith.constant 0 : index
    %c0_0 = arith.constant 0 : index
    %c0_1 = arith.constant 0 : index
    %c0_2 = arith.constant 0 : index
    %c0_3 = arith.constant 0 : index
    %0 = vector.load %arg2[%c0, %c0_0, %c0_1, %c0_2, %c0_3] : memref<1x2x8x2x128xf32, #tpu.memory_space<vmem>>, vector<1x2x8x2x128xf32>
    %1 = vector.shape_cast %0 : vector<1x2x8x2x128xf32> to vector<2x8x2x128xf32>
    %c0_4 = arith.constant 0 : index
    %c0_5 = arith.constant 0 : index
    %c0_6 = arith.constant 0 : index
    %c0_7 = arith.constant 0 : index
    %c0_8 = arith.constant 0 : index
    %2 = vector.load %arg3[%c0_4, %c0_5, %c0_6, %c0_7, %c0_8] : memref<1x2x8x2x128xf32, #tpu.memory_space<vmem>>, vector<1x2x8x2x128xf32>
    %3 = vector.shape_cast %2 : vector<1x2x8x2x128xf32> to vector<2x8x2x128xf32>
    %c0_9 = arith.constant 0 : index
    %c1 = arith.constant 1 : index
    %c0_10 = arith.constant 0 : index
    %c0_11 = arith.constant 0 : index
    %4 = vector.load %arg5[%c0_9, %c1, %c0_10, %c0_11] : memref<2x10x2x128xf32, #tpu.memory_space<vmem>>, vector<2x8x2x128xf32>
    tpu.vector_store %arg5[%c0_9, %c1, %c0_10, %c0_11], %1 {strides = array<i32>} : memref<2x10x2x128xf32, #tpu.memory_space<vmem>>, vector<2x8x2x128xf32>,
    %cst = arith.constant 0.000000e+00 : f32
    %5 = vector.broadcast %cst : f32 to vector<2x1x2x128xf32>
    %c0_12 = arith.constant 0 : index
    %c0_13 = arith.constant 0 : index
    %c0_14 = arith.constant 0 : index
    %c0_15 = arith.constant 0 : index
    %6 = vector.load %arg5[%c0_12, %c0_13, %c0_14, %c0_15] : memref<2x10x2x128xf32, #tpu.memory_space<vmem>>, vector<2x1x2x128xf32>
    tpu.vector_store %arg5[%c0_12, %c0_13, %c0_14, %c0_15], %5 {strides = array<i32>} : memref<2x10x2x128xf32, #tpu.memory_space<vmem>>, vector<2x1x2x128xf32>,
    %c0_16 = arith.constant 0 : index
    %c9 = arith.constant 9 : index
    %c0_17 = arith.constant 0 : index
    %c0_18 = arith.constant 0 : index
    %7 = vector.load %arg5[%c0_16, %c9, %c0_17, %c0_18] : memref<2x10x2x128xf32, #tpu.memory_space<vmem>>, vector<2x1x2x128xf32>
    tpu.vector_store %arg5[%c0_16, %c9, %c0_17, %c0_18], %5 {strides = array<i32>} : memref<2x10x2x128xf32, #tpu.memory_space<vmem>>, vector<2x1x2x128xf32>,
    %c0_19 = arith.constant 0 : index
    %c1_20 = arith.constant 1 : index
    %c0_21 = arith.constant 0 : index
    %c0_22 = arith.constant 0 : index
    %8 = vector.load %arg6[%c0_19, %c1_20, %c0_21, %c0_22] : memref<2x10x2x128xf32, #tpu.memory_space<vmem>>, vector<2x8x2x128xf32>
    tpu.vector_store %arg6[%c0_19, %c1_20, %c0_21, %c0_22], %3 {strides = array<i32>} : memref<2x10x2x128xf32, #tpu.memory_space<vmem>>, vector<2x8x2x128xf32>,
    %cst_23 = arith.constant 0.000000e+00 : f32
    %9 = vector.broadcast %cst_23 : f32 to vector<2x1x2x128xf32>
    %c0_24 = arith.constant 0 : index
    %c0_25 = arith.constant 0 : index
    %c0_26 = arith.constant 0 : index
    %c0_27 = arith.constant 0 : index
    %10 = vector.load %arg6[%c0_24, %c0_25, %c0_26, %c0_27] : memref<2x10x2x128xf32, #tpu.memory_space<vmem>>, vector<2x1x2x128xf32>
    tpu.vector_store %arg6[%c0_24, %c0_25, %c0_26, %c0_27], %9 {strides = array<i32>} : memref<2x10x2x128xf32, #tpu.memory_space<vmem>>, vector<2x1x2x128xf32>,
    %c0_28 = arith.constant 0 : index
    %c9_29 = arith.constant 9 : index
    %c0_30 = arith.constant 0 : index
    %c0_31 = arith.constant 0 : index
    %11 = vector.load %arg6[%c0_28, %c9_29, %c0_30, %c0_31] : memref<2x10x2x128xf32, #tpu.memory_space<vmem>>, vector<2x1x2x128xf32>
    tpu.vector_store %arg6[%c0_28, %c9_29, %c0_30, %c0_31], %9 {strides = array<i32>} : memref<2x10x2x128xf32, #tpu.memory_space<vmem>>, vector<2x1x2x128xf32>,
    %12 = arith.subf %1, %1 : vector<2x8x2x128xf32>
    %13 = arith.mulf %3, %12 : vector<2x8x2x128xf32>
    %14 = arith.addf %1, %13 : vector<2x8x2x128xf32>
    %c0_32 = arith.constant 0 : index
    %c0_33 = arith.constant 0 : index
    %c0_34 = arith.constant 0 : index
    %c0_35 = arith.constant 0 : index
    %c0_36 = arith.constant 0 : index
    %c0_37 = arith.constant 0 : index
    %15 = vector.load %arg4[%c0_32, %c0_33, %c0_34, %c0_35, %c0_36, %c0_37] : memref<1x2x2x8x2x128xf32, #tpu.memory_space<vmem>>, vector<1x1x2x8x2x128xf32>
    %16 = vector.shape_cast %15 : vector<1x1x2x8x2x128xf32> to vector<2x8x2x128xf32>
    %17 = vector.shape_cast %14 : vector<2x8x2x128xf32> to vector<1x1x2x8x2x128xf32>
    tpu.vector_store %arg4[%c0_32, %c0_33, %c0_34, %c0_35, %c0_36, %c0_37], %17 {strides = array<i32>} : memref<1x2x2x8x2x128xf32, #tpu.memory_space<vmem>>, vector<1x1x2x8x2x128xf32>,
    %c0_38 = arith.constant 0 : index
    %c0_39 = arith.constant 0 : index
    %c0_40 = arith.constant 0 : index
    %c0_41 = arith.constant 0 : index
    %18 = vector.load %arg5[%c0_38, %c0_39, %c0_40, %c0_41] : memref<2x10x2x128xf32, #tpu.memory_space<vmem>>, vector<2x8x2x128xf32>
    %19 = arith.addf %1, %18 : vector<2x8x2x128xf32>
    %c0_42 = arith.constant 0 : index
    %c2 = arith.constant 2 : index
    %c0_43 = arith.constant 0 : index
    %c0_44 = arith.constant 0 : index
    %20 = vector.load %arg5[%c0_42, %c2, %c0_43, %c0_44] : memref<2x10x2x128xf32, #tpu.memory_space<vmem>>, vector<2x8x2x128xf32>
    %21 = arith.addf %19, %20 : vector<2x8x2x128xf32>
    %c0_45 = arith.constant 0 : index
    %c0_46 = arith.constant 0 : index
    %c0_47 = arith.constant 0 : index
    %c0_48 = arith.constant 0 : index
    %22 = vector.load %arg6[%c0_45, %c0_46, %c0_47, %c0_48] : memref<2x10x2x128xf32, #tpu.memory_space<vmem>>, vector<2x8x2x128xf32>
    %23 = arith.addf %3, %22 : vector<2x8x2x128xf32>
    %c0_49 = arith.constant 0 : index
    %c2_50 = arith.constant 2 : index
    %c0_51 = arith.constant 0 : index
    %c0_52 = arith.constant 0 : index
    %24 = vector.load %arg6[%c0_49, %c2_50, %c0_51, %c0_52] : memref<2x10x2x128xf32, #tpu.memory_space<vmem>>, vector<2x8x2x128xf32>
    %25 = arith.addf %23, %24 : vector<2x8x2x128xf32>
    %cst_53 = arith.constant 1.000000e+00 : f32
    %26 = vector.broadcast %cst_53 : f32 to vector<2x8x2x128xf32>
    %27 = arith.maximumf %25, %26 : vector<2x8x2x128xf32>
    %28 = tpu.reciprocal %27 {approx = true} : vector<2x8x2x128xf32> -> vector<2x8x2x128xf32>
    %29 = arith.mulf %27, %28 : vector<2x8x2x128xf32>
    %cst_54 = arith.constant 2.000000e+00 : f32
    %30 = vector.broadcast %cst_54 : f32 to vector<2x8x2x128xf32>
    %31 = arith.subf %30, %29 : vector<2x8x2x128xf32>
    %32 = arith.mulf %28, %31 : vector<2x8x2x128xf32>
    %33 = arith.mulf %27, %32 : vector<2x8x2x128xf32>
    %cst_55 = arith.constant 2.000000e+00 : f32
    %34 = vector.broadcast %cst_55 : f32 to vector<2x8x2x128xf32>
    %35 = arith.subf %34, %33 : vector<2x8x2x128xf32>
    %36 = arith.mulf %32, %35 : vector<2x8x2x128xf32>
    %37 = arith.mulf %21, %36 : vector<2x8x2x128xf32>
    %38 = arith.subf %1, %37 : vector<2x8x2x128xf32>
    %39 = arith.mulf %3, %38 : vector<2x8x2x128xf32>
    %40 = arith.addf %37, %39 : vector<2x8x2x128xf32>
    %c0_56 = arith.constant 0 : index
    %c1_57 = arith.constant 1 : index
    %c0_58 = arith.constant 0 : index
    %c0_59 = arith.constant 0 : index
    %c0_60 = arith.constant 0 : index
    %c0_61 = arith.constant 0 : index
    %41 = vector.load %arg4[%c0_56, %c1_57, %c0_58, %c0_59, %c0_60, %c0_61] : memref<1x2x2x8x2x128xf32, #tpu.memory_space<vmem>>, vector<1x1x2x8x2x128xf32>
    %42 = vector.shape_cast %41 : vector<1x1x2x8x2x128xf32> to vector<2x8x2x128xf32>
    %43 = vector.shape_cast %40 : vector<2x8x2x128xf32> to vector<1x1x2x8x2x128xf32>
    tpu.vector_store %arg4[%c0_56, %c1_57, %c0_58, %c0_59, %c0_60, %c0_61], %43 {strides = array<i32>} : memref<1x2x2x8x2x128xf32, #tpu.memory_space<vmem>>, vector<1x1x2x8x2x128xf32>,
    return
  }
  func.func @transform_0(%arg0: i32, %arg1: i32) -> (i32, i32, i32, i32, i32) {
    %c0_i32 = arith.constant 0 : i32
    %c0_i32_0 = arith.constant 0 : i32
    %c0_i32_1 = arith.constant 0 : i32
    %c0_i32_2 = arith.constant 0 : i32
    return %arg0, %c0_i32, %c0_i32_0, %arg1, %c0_i32_1 : i32, i32, i32, i32, i32
  }
  func.func @transform_1(%arg0: i32, %arg1: i32) -> (i32, i32, i32, i32, i32) {
    %c0_i32 = arith.constant 0 : i32
    %c0_i32_0 = arith.constant 0 : i32
    %c0_i32_1 = arith.constant 0 : i32
    %c0_i32_2 = arith.constant 0 : i32
    return %arg0, %c0_i32, %c0_i32_0, %arg1, %c0_i32_1 : i32, i32, i32, i32, i32
  }
  func.func @transform_2(%arg0: i32, %arg1: i32) -> (i32, i32, i32, i32, i32, i32) {
    %c0_i32 = arith.constant 0 : i32
    %c0_i32_0 = arith.constant 0 : i32
    %c0_i32_1 = arith.constant 0 : i32
    %c0_i32_2 = arith.constant 0 : i32
    %c0_i32_3 = arith.constant 0 : i32
    return %arg0, %c0_i32, %c0_i32_0, %c0_i32_1, %arg1, %c0_i32_2 : i32, i32, i32, i32, i32, i32
  }
}

</mosaic_0001>

<bundles_post_ra>
// kernel: averaging_in_kspace.1
= control target key start
LH: loop header
LB: loop body
LE: loop exit
PB: predicated region body
PF: predicated region fallthrough
CT: control target
= control target key end

     0   :  { %s915_s9 = smov 0   ;;  %s917_s10 = smov 0   ;;  %s1390_s0 = inlined_call_operand.vmem [shape: f32[2,2,8,2,128], index: 0, kind: input, shape index: {}]   ;;  %s1391_s1 = inlined_call_operand.vmem [shape: f32[2,2,8,2,128], index: 1, kind: input, shape index: {}]   ;;  %s1392_s2 = inlined_call_operand.vmem [shape: f32[2,2,2,8,2,128], index: 2, kind: output, shape index: {}]  }
   0x1   :  { %s919_s11 = smov 0  }
   0x2 LB: > { %s24_s12 = sadd.s32 1, %s893_s10  ;;  %p790_p0 = scmp.ge.s32.totalorder %s897_s11, 1  ;;  %s897_s11 = sphi %s919_s11, %s12_s11   ;;  %s893_s10 = sphi %s917_s10, %s1447_s10   ;;  %s889_s9 = sphi %s915_s9, %s1446_s9  }
   0x3   : > { %p26_p1 = scmp.ge.s32.totalorder %s24_s12, 2  ;;  %p146_p2 = scmp.lt.s32.totalorder %s897_s11, 3 }
   0x5   : > { %s1449_s12 = smov (%p26_p1, %s24_s12), 0  ;;  %p147_p3 = pnand %p790_p0, %p146_p2 }
   0x7   : > { %150 = sbr.rel (%p147_p3) target bundleno = 140 (0x8c), region = 28 }
   0xc   : > { %p182_p4 = scmp.lt.s32.totalorder %s889_s9, 1  ;;  %v899_v0 = vmov 0.0  }
   0xd   : > { %277 = vst [vmem:[#allocation3] sm:$0x3] %v899_v0 }
   0xe   : > { %255 = vst [vmem:[#allocation2] sm:$0x3] %v899_v0  ;;  %s1451_s9 = smov (!%p182_p4, %s889_s9), 1 }
   0xf   : > { %256 = vst [vmem:[#allocation2 + $0x14] sm:$0x3] %v899_v0  ;;  %s815_s13 = sshll.u32 %s1451_s9, 5  ;;  %s817_s20 = sshll.u32 %s1451_s9, 6 }
  0x10   : > { %258 = vst [vmem:[#allocation2 + $0x12] sm:$0x3] %v899_v0  ;;  %s939_s16 = scalar_lea.vmem %s1391_s1, %s815_s13  ;;  %s985_s19 = scalar_lea.vmem %s1390_s0, %s815_s13 }
  0x11   : > { %259 = vst [vmem:[#allocation2 + $0x26] sm:$0x3] %v899_v0  ;;  %v942_v1 = vld [vmem:[%s939_s16] sm:$0x3]  ;;  %v945_v2 = vld [vmem:[%s939_s16 + $0x2] sm:$0x3]  ;;  %s1180_s23 = scalar_lea.vmem %s1392_s2, %s817_s20 }
  0x12   : > { %278 = vst [vmem:[#allocation3 + $0x14] sm:$0x3] %v899_v0  ;;  %v948_v3 = vld [vmem:[%s939_s16 + $0x4] sm:$0x3]  ;;  %v952_v4 = vld [vmem:[%s939_s16 + $0x6] sm:$0x3] }
  0x13   : > { %280 = vst [vmem:[#allocation3 + $0x12] sm:$0x3] %v899_v0  ;;  %v956_v5 = vld [vmem:[%s939_s16 + $0x8] sm:$0x3]  ;;  %v960_v6 = vld [vmem:[%s939_s16 + $0xa] sm:$0x3] }
  0x14   : > { %281 = vst [vmem:[#allocation3 + $0x26] sm:$0x3] %v899_v0  ;;  %v964_v7 = vld [vmem:[%s939_s16 + $0xc] sm:$0x3]  ;;  %v968_v8 = vld [vmem:[%s939_s16 + $0x10] sm:$0x3] }
  0x15   : > { %1412 = vst [vmem:[#allocation4_spill] sm:$0xff] %v948_v3  ;;  %v972_v9 = vld [vmem:[%s939_s16 + $0x12] sm:$0x3]  ;;  %v976_v10 = vld [vmem:[%s939_s16 + $0x14] sm:$0x3] }
  0x16   : > { %261 = vst [vmem:[#allocation3 + $0x2] sm:$0x3] %v942_v1  ;;  %v980_v11 = vld [vmem:[%s939_s16 + $0x16] sm:$0x3]  ;;  %v989_v12 = vld [vmem:[%s939_s16 + $0x18] sm:$0x3] }
  0x17   : > { %1413 = vst [vmem:[#allocation5_spill] sm:$0xff] %v952_v4  ;;  %v993_v13 = vld [vmem:[%s939_s16 + $0x1a] sm:$0x3]  ;;  %v997_v14 = vld [vmem:[%s939_s16 + $0x1c] sm:$0x3] }
  0x18   : > { %262 = vst [vmem:[#allocation3 + $0x4] sm:$0x3] %v945_v2  ;;  %v1000_v15 = vld [vmem:[%s939_s16 + $0xe] sm:$0x3]  ;;  %v411_v16 = vld [vmem:[#allocation3] sm:$0x3] }
  0x19   : > { %1414 = vst [vmem:[#allocation6_spill] sm:$0xff] %v956_v5  ;;  %v419_v17 = vld [vmem:[#allocation3 + $0x14] sm:$0x3]  ;;  %v1004_v18 = vld [vmem:[%s939_s16 + $0x1e] sm:$0x3]  ;;  %v427_v29 = vadd.f32 %v411_v16, %v942_v1 }
  0x1a   : > { %263 = vst [vmem:[#allocation3 + $0x6] sm:$0x3] %v948_v3  ;;  %v1007_v19 = vld [vmem:[%s985_s19] sm:$0x3]  ;;  %v1011_v21 = vld [vmem:[%s985_s19 + $0x2] sm:$0x3]  ;;  %v435_v31 = vadd.f32 %v419_v17, %v968_v8 }
  0x1b   : > { %1415 = vst [vmem:[#allocation7_spill] sm:$0xff] %v960_v6  ;;  %v1015_v23 = vld [vmem:[%s985_s19 + $0x4] sm:$0x3]  ;;  %v1019_v26 = vld [vmem:[%s985_s19 + $0x6] sm:$0x3]  ;;  %v282_v44 = vsub.f32 %v1007_v19, %v1007_v19  ;;  %v283_v45 = vsub.f32 %v1011_v21, %v1011_v21 }
  0x1c   : > { %264 = vst [vmem:[#allocation3 + $0x8] sm:$0x3] %v952_v4  ;;  %v1023_v28 = vld [vmem:[%s985_s19 + $0x8] sm:$0x3]  ;;  %v1029_v33 = vld [vmem:[%s985_s19 + $0x10] sm:$0x3]  ;;  %v284_v46 = vsub.f32 %v1015_v23, %v1015_v23  ;;  %v285_v50 = vsub.f32 %v1019_v26, %v1019_v26 }
  0x1d   : > { %1416 = vst [vmem:[#allocation8_spill] sm:$0xff] %v964_v7  ;;  %v412_v20 = vld [vmem:[#allocation3 + $0x2] sm:$0x3]  ;;  %v1045_v40 = vld [vmem:[%s985_s19 + $0x12] sm:$0x3]  ;;  %v286_v51 = vsub.f32 %v1023_v28, %v1023_v28  ;;  %v298_v56 = vmul.f32 %v282_v44, %v942_v1  ;;  %v299_v57 = vmul.f32 %v283_v45, %v945_v2 }
  0x1e   : > { %265 = vst [vmem:[#allocation3 + $0xa] sm:$0x3] %v956_v5  ;;  %v1032_v34 = vadd.f32 %v412_v20, %v945_v2  ;;  %v1052_v43 = vld [vmem:[%s985_s19 + $0xa] sm:$0x3]  ;;  %v1065_v49 = vld [vmem:[%s985_s19 + $0x14] sm:$0x3]  ;;  %v300_v58 = vmul.f32 %v284_v46, %v948_v3  ;;  %v301_v0 = vmul.f32 %v285_v50, %v952_v4 }
  0x1f   : > { %266 = vst [vmem:[#allocation3 + $0xc] sm:$0x3] %v960_v6  ;;  %v413_v22 = vld [vmem:[#allocation3 + $0x4] sm:$0x3]  ;;  %v287_v52 = vsub.f32 %v1052_v43, %v1052_v43  ;;  %v1078_v54 = vld [vmem:[%s985_s19 + $0x16] sm:$0x3] }
  0x20   : > { %1417 = vst [vmem:[#allocation9_spill] sm:$0xff] %v972_v9  ;;  %v1035_v35 = vadd.f32 %v413_v22, %v948_v3  ;;  %v1081_v55 = vld [vmem:[%s985_s19 + $0x18] sm:$0x3]  ;;  %v346_v62 = vld [vmem:[#allocation2] sm:$0x3]  ;;  %v1120_v45 = vadd.f32 %v300_v58, %v1015_v23  ;;  %v1131_v50 = vadd.f32 %v301_v0, %v1019_v26 }
  0x21   : > { %267 = vst [vmem:[#allocation3 + $0xe] sm:$0x3] %v964_v7  ;;  %v414_v24 = vld [vmem:[#allocation3 + $0x6] sm:$0x3]  ;;  %v444_v63 = vld [vmem:[#allocation3 + $0x4] sm:$0x3] }
  0x22   : > { %1418 = vst [vmem:[#allocation10_spill] sm:$0xff] %v976_v10  ;;  %v1038_v36 = vadd.f32 %v414_v24, %v952_v4  ;;  %v460_v17 = vadd.f32 %v444_v63, %v427_v29  ;;  %v354_v20 = vld [vmem:[#allocation2 + $0x14] sm:$0x3]  ;;  %v302_v24 = vmul.f32 %v286_v51, %v956_v5  ;;  %v1114_v29 = vld [vmem:[%s985_s19 + $0xe] sm:$0x3]  ;;  %v292_v63 = vsub.f32 %v1065_v49, %v1065_v49 }
  0x23   : > { %269 = vst [vmem:[#allocation3 + $0x16] sm:$0x3] %v968_v8  ;;  %v415_v25 = vld [vmem:[#allocation3 + $0x8] sm:$0x3]  ;;  %v370_v44 = vadd.f32 %v354_v20, %v1029_v33  ;;  %v1126_v46 = vld [vmem:[%s985_s19 + $0x1a] sm:$0x3]  ;;  %v289_v51 = vsub.f32 %v1114_v29, %v1114_v29  ;;  %v293_v20 = vsub.f32 %v1078_v54, %v1078_v54 }
  0x24   : > { %1419 = vst [vmem:[#allocation11_spill] sm:$0xff] %v980_v11  ;;  %v1041_v37 = vadd.f32 %v415_v25, %v956_v5  ;;  %v303_v25 = vmul.f32 %v287_v52, %v960_v6  ;;  %v290_v52 = vsub.f32 %v1029_v33, %v1029_v33 }
  0x25   : > { %270 = vst [vmem:[#allocation3 + $0x18] sm:$0x3] %v972_v9  ;;  %v416_v27 = vld [vmem:[#allocation3 + $0xa] sm:$0x3]  ;;  %v305_v0 = vmul.f32 %v289_v51, %v1000_v15 }
  0x26   : > { %1420 = vst [vmem:[#allocation12_spill] sm:$0xff] %v989_v12  ;;  %v417_v30 = vld [vmem:[#allocation3 + $0xc] sm:$0x3]  ;;  %v1048_v41 = vadd.f32 %v416_v27, %v960_v6  ;;  %v1105_v27 = vld [vmem:[%s985_s19 + $0xc] sm:$0x3]  ;;  %v309_v6 = vmul.f32 %v293_v20, %v980_v11 }
  0x27   : > { %271 = vst [vmem:[#allocation3 + $0x1a] sm:$0x3] %v976_v10  ;;  %v1061_v47 = vadd.f32 %v417_v30, %v964_v7  ;;  %v362_v30 = vadd.f32 %v346_v62, %v1007_v19  ;;  %v291_v62 = vsub.f32 %v1045_v40, %v1045_v40 }
  0x28   : > { %1421 = vst [vmem:[#allocation13_spill] sm:$0xff] %v993_v13  ;;  %v418_v32 = vld [vmem:[#allocation3 + $0xe] sm:$0x3] }
  0x29   : > { %272 = vst [vmem:[#allocation3 + $0x1c] sm:$0x3] %v980_v11  ;;  %v1074_v53 = vadd.f32 %v418_v32, %v1000_v15 }
  0x2a   : > { %1422 = vst [vmem:[#allocation14_spill] sm:$0xff] %v1000_v15  ;;  %v420_v38 = vld [vmem:[#allocation3 + $0x16] sm:$0x3] }
  0x2b   : > { %273 = vst [vmem:[#allocation3 + $0x1e] sm:$0x3] %v989_v12  ;;  %v1087_v59 = vadd.f32 %v420_v38, %v972_v9  ;;  %v314_v38 = vadd.f32 %v298_v56, %v1007_v19  ;;  %v1139_v56 = vld [vmem:[%s985_s19 + $0x1c] sm:$0x3] }
  0x2c   : > { %274 = vst [vmem:[#allocation3 + $0x20] sm:$0x3] %v993_v13  ;;  %v421_v39 = vld [vmem:[#allocation3 + $0x18] sm:$0x3] }
  0x2d   : > { %275 = vst [vmem:[#allocation3 + $0x22] sm:$0x3] %v997_v14  ;;  %v1090_v60 = vadd.f32 %v421_v39, %v976_v10  ;;  %v452_v22 = vld [vmem:[#allocation3 + $0x18] sm:$0x3]  ;;  %v1110_v39 = vadd.f32 %v299_v57, %v1011_v21 }
  0x2e   : > { %1423 = vst [vmem:[#allocation15_spill] sm:$0xff] %v1015_v23  ;;  %v422_v42 = vld [vmem:[#allocation3 + $0x1a] sm:$0x3]  ;;  %v468_v32 = vadd.f32 %v452_v22, %v435_v31  ;;  %v288_v31 = vsub.f32 %v1105_v27, %v1105_v27  ;;  %v1156_v22 = vld [vmem:[%s985_s19 + $0x1e] sm:$0x3] }
  0x2f   : > { %268 = vst [vmem:[#allocation3 + $0x10] sm:$0x3] %v1000_v15  ;;  %v1093_v61 = vadd.f32 %v422_v42, %v980_v11  ;;  %v1116_v42 = vmax.f32 %v460_v17, 1.0  ;;  %v306_v17 = vmul.f32 %v290_v52, %v968_v8  ;;  %v308_v15 = vmul.f32 %v292_v63, %v976_v10  ;;  %v446_v10 = vld [vmem:[#allocation3 + $0x8] sm:$0x3] }
  0x30   : > { %276 = vst [vmem:[#allocation3 + $0x24] sm:$0x3] %v1004_v18  ;;  %v423_v48 = vld [vmem:[#allocation3 + $0x1c] sm:$0x3]  ;;  %v304_v58 = vmul.f32 %v288_v31, %v964_v7  ;;  %v319_v31 = vadd.f32 %v303_v25, %v1052_v43  ;;  %v294_v7 = vsub.f32 %v1081_v55, %v1081_v55  ;;  %v296_v63 = vsub.f32 %v1139_v56, %v1139_v56 }
  0x31   : > { %239 = vst [vmem:[#allocation2 + $0x2] sm:$0x3] %v1007_v19  ;;  %v1098_v16 = vadd.f32 %v423_v48, %v989_v12  ;;  %v1128_v48 = vmax.f32 %v468_v32, 1.0  ;;  %843 = vrcp.f32 %v1116_v42  ;;  %v318_v32 = vadd.f32 %v302_v24, %v1023_v28 }
  0x32   : > { %240 = vst [vmem:[#allocation2 + $0x4] sm:$0x3] %v1011_v21  ;;  %v295_v24 = vsub.f32 %v1126_v46, %v1126_v46  ;;  %v320_v25 = vadd.f32 %v304_v58, %v1105_v27  ;;  %v324_v3 = vadd.f32 %v308_v15, %v1065_v49 }
  0x33   : > { %241 = vst [vmem:[#allocation2 + $0x6] sm:$0x3] %v1015_v23  ;;  %845 = vrcp.f32 %v1128_v48 }
  0x34   : > { %242 = vst [vmem:[#allocation2 + $0x8] sm:$0x3] %v1019_v26  ;;  %v311_v58 = vmul.f32 %v295_v24, %v993_v13 }
  0x35   : > { %1424 = vst [vmem:[#allocation16_spill] sm:$0xff] %v1065_v49 }
  0x36   : > { %243 = vst [vmem:[#allocation2 + $0xa] sm:$0x3] %v1023_v28 }
  0x37   : > { %1425 = vst [vmem:[#allocation17_spill] sm:$0xff] %v1078_v54  ;;  %v844_v20 = vpop.eup %843 }
  0x38   : > { %1426 = vst [vmem:[#allocation18_spill] sm:$0xff] %v1081_v55  ;;  %v508_v4 = vmul.f32 %v844_v20, %v1116_v42 }
  0x39   : > { %1427 = vst [vmem:[#allocation19_spill] sm:$0xff] %v1093_v61  ;;  %v379_v57 = vld [vmem:[#allocation2 + $0x4] sm:$0x3]  ;;  %v347_v61 = vld [vmem:[#allocation2 + $0x2] sm:$0x3]  ;;  %v846_v13 = vpop.eup %845 }
  0x3a   : > { %247 = vst [vmem:[#allocation2 + $0x16] sm:$0x3] %v1029_v33  ;;  %v1164_v51 = vadd.f32 %v379_v57, %v362_v30  ;;  %v348_v5 = vld [vmem:[#allocation2 + $0x4] sm:$0x3]  ;;  %v310_v30 = vmul.f32 %v294_v7, %v989_v12  ;;  %v380_v7 = vld [vmem:[#allocation2 + $0x6] sm:$0x3]  ;;  %v363_v11 = vadd.f32 %v347_v61, %v1011_v21 }
  0x3b   : > { %1428 = vst [vmem:[#allocation20_spill] sm:$0xff] %v1098_v16  ;;  %v307_v16 = vmul.f32 %v291_v62, %v972_v9  ;;  %v321_v62 = vadd.f32 %v305_v0, %v1114_v29  ;;  %v1174_v9 = vadd.f32 %v306_v17, %v1029_v33  ;;  %v297_v0 = vsub.f32 %v1156_v22, %v1156_v22  ;;  %v445_v17 = vld [vmem:[#allocation3 + $0x6] sm:$0x3]  ;;  %v381_v24 = vld [vmem:[#allocation2 + $0x8] sm:$0x3] }
  0x3c   : > { %248 = vst [vmem:[#allocation2 + $0x18] sm:$0x3] %v1045_v40  ;;  %v349_v61 = vld [vmem:[#allocation2 + $0x6] sm:$0x3]  ;;  %v350_v15 = vld [vmem:[#allocation2 + $0x8] sm:$0x3] }
  0x3d   : > { %249 = vst [vmem:[#allocation2 + $0x1a] sm:$0x3] %v1065_v49  ;;  %v323_v12 = vadd.f32 %v307_v16, %v1045_v40  ;;  %v1201_v16 = vadd.f32 %v310_v30, %v1081_v55  ;;  %v313_v30 = vmul.f32 %v297_v0, %v1004_v18  ;;  %v448_v49 = vld [vmem:[#allocation3 + $0xc] sm:$0x3] }
  0x3e   : > { %250 = vst [vmem:[#allocation2 + $0x1c] sm:$0x3] %v1078_v54 }
  0x3f   : > { %251 = vst [vmem:[#allocation2 + $0x1e] sm:$0x3] %v1081_v55  ;;  %v1215_v55 = vadd.f32 %v380_v7, %v363_v11  ;;  %v365_v11 = vadd.f32 %v349_v61, %v1019_v26 }
  0x40   : > { %244 = vst [vmem:[#allocation2 + $0xc] sm:$0x3] %v1052_v43 }
  0x41   : > { %245 = vst [vmem:[#allocation2 + $0xe] sm:$0x3] %v1105_v27 }
  0x42   : > { %252 = vst [vmem:[#allocation2 + $0x20] sm:$0x3] %v1126_v46 }
  0x43   : > { %253 = vst [vmem:[#allocation2 + $0x22] sm:$0x3] %v1139_v56  ;;  %v387_v52 = vld [vmem:[#allocation2 + $0x18] sm:$0x3] }
  0x44   : > { %246 = vst [vmem:[#allocation2 + $0x10] sm:$0x3] %v1114_v29  ;;  %v1183_v57 = vadd.f32 %v387_v52, %v370_v44  ;;  %v461_v44 = vadd.f32 %v445_v17, %v1032_v34  ;;  %v364_v52 = vadd.f32 %v348_v5, %v1015_v23  ;;  %v447_v34 = vld [vmem:[#allocation3 + $0xa] sm:$0x3]  ;;  %v516_v5 = vmul.f32 %v846_v13, %v1128_v48 }
  0x45   : > { %254 = vst [vmem:[#allocation2 + $0x24] sm:$0x3] %v1156_v22  ;;  %v1207_v17 = vadd.f32 %v311_v58, %v1126_v46  ;;  %v312_v23 = vmul.f32 %v296_v63, %v997_v14  ;;  %v382_v63 = vld [vmem:[#allocation2 + $0xa] sm:$0x3] }
  0x46   : > { %330 = vst [vmem:[%s1180_s23] sm:$0x3] %v314_v38  ;;  %v325_v38 = vadd.f32 %v309_v6, %v1078_v54  ;;  %v524_v6 = vsub.f32 2.0, %v508_v4  ;;  %v462_v54 = vadd.f32 %v446_v10, %v1035_v35  ;;  %v1220_v58 = vadd.f32 %v381_v24, %v364_v52  ;;  %v351_v4 = vld [vmem:[#allocation2 + $0xa] sm:$0x3]  ;;  %v449_v35 = vld [vmem:[#allocation3 + $0xe] sm:$0x3] }
  0x47   : > { %331 = vst [vmem:[%s1180_s23 + $0x2] sm:$0x3] %v1110_v39  ;;  %v1210_v39 = vmax.f32 %v461_v44, 1.0  ;;  %v463_v44 = vadd.f32 %v447_v34, %v1038_v36  ;;  %v464_v10 = vadd.f32 %v448_v49, %v1041_v37  ;;  %v328_v52 = vadd.f32 %v312_v23, %v1139_v56  ;;  %v383_v37 = vld [vmem:[#allocation2 + $0xc] sm:$0x3] }
  0x48   : > { %332 = vst [vmem:[%s1180_s23 + $0x4] sm:$0x3] %v1120_v45  ;;  %v532_v45 = vsub.f32 2.0, %v516_v5  ;;  %v1224_v0 = vmax.f32 %v462_v54, 1.0  ;;  %v366_v36 = vadd.f32 %v350_v15, %v1023_v28  ;;  %v367_v23 = vadd.f32 %v351_v4, %v1052_v43  ;;  %v384_v34 = vld [vmem:[#allocation2 + $0xe] sm:$0x3] }
  0x49   : > { %333 = vst [vmem:[%s1180_s23 + $0x6] sm:$0x3] %v1131_v50  ;;  %847 = vrcp.f32 %v1210_v39  ;;  %v540_v50 = vmul.f32 %v844_v20, %v524_v6  ;;  %v1230_v24 = vmax.f32 %v463_v44, 1.0  ;;  %v451_v20 = vld [vmem:[#allocation3 + $0x12] sm:$0x3]  ;;  %v1237_v49 = vmax.f32 %v464_v10, 1.0 }
  0x4a   : > { %334 = vst [vmem:[%s1180_s23 + $0x8] sm:$0x3] %v318_v32  ;;  %v450_v32 = vld [vmem:[#allocation3 + $0x10] sm:$0x3]  ;;  %v548_v7 = vmul.f32 %v846_v13, %v532_v45  ;;  %849 = vrcp.f32 %v1224_v0  ;;  %v1246_v61 = vadd.f32 %v382_v63, %v365_v11  ;;  %v1251_v15 = vadd.f32 %v383_v37, %v366_v36  ;;  %v386_v36 = vld [vmem:[#allocation2 + $0x12] sm:$0x3] }
  0x4b   : > { %335 = vst [vmem:[%s1180_s23 + $0xa] sm:$0x3] %v319_v31  ;;  %v556_v54 = vmul.f32 %v540_v50, %v1116_v42  ;;  %v329_v31 = vadd.f32 %v313_v30, %v1156_v22  ;;  %851 = vrcp.f32 %v1230_v24  ;;  %v352_v42 = vld [vmem:[#allocation2 + $0xc] sm:$0x3]  ;;  %v467_v30 = vadd.f32 %v451_v20, %v1074_v53  ;;  %v385_v4 = vld [vmem:[#allocation2 + $0x10] sm:$0x3] }
  0x4c   : > { %336 = vst [vmem:[%s1180_s23 + $0xc] sm:$0x3] %v320_v25  ;;  %v564_v13 = vmul.f32 %v548_v7, %v1128_v48  ;;  %v465_v25 = vadd.f32 %v449_v35, %v1048_v41  ;;  %853 = vrcp.f32 %v1237_v49  ;;  %v466_v48 = vadd.f32 %v450_v32, %v1061_v47  ;;  %v353_v41 = vld [vmem:[#allocation2 + $0xe] sm:$0x3]  ;;  %v453_v35 = vld [vmem:[#allocation3 + $0x1a] sm:$0x3] }
  0x4d   : > { %337 = vst [vmem:[%s1180_s23 + $0xe] sm:$0x3] %v321_v62  ;;  %v572_v62 = vsub.f32 2.0, %v556_v54  ;;  %v368_v63 = vadd.f32 %v352_v42, %v1105_v27  ;;  %v1266_v11 = vmax.f32 %v467_v30, 1.0  ;;  %v369_v10 = vadd.f32 %v353_v41, %v1114_v29 }
  0x4e   : > { %338 = vst [vmem:[%s1180_s23 + $0x10] sm:$0x3] %v1174_v9  ;;  %v580_v9 = vsub.f32 2.0, %v564_v13  ;;  %v1253_v6 = vmax.f32 %v465_v25, 1.0  ;;  %v1259_v44 = vmax.f32 %v466_v48, 1.0  ;;  %v469_v20 = vadd.f32 %v453_v35, %v1087_v59 }
  0x4f   : > { %339 = vst [vmem:[%s1180_s23 + $0x12] sm:$0x3] %v323_v12  ;;  %v848_v5 = vpop.eup %847  ;;  %v588_v12 = vmul.f32 %v572_v62, %v540_v50  ;;  %v1281_v13 = vadd.f32 %v385_v4, %v368_v63 }
  0x50   : > { %340 = vst [vmem:[%s1180_s23 + $0x14] sm:$0x3] %v324_v3  ;;  %v509_v45 = vmul.f32 %v848_v5, %v1210_v39  ;;  %v596_v47 = vmul.f32 %v580_v9, %v548_v7  ;;  %v1263_v3 = vadd.f32 %v384_v34, %v367_v23  ;;  %855 = vrcp.f32 %v1253_v6  ;;  %v850_v53 = vpop.eup %849 }
  0x51   : > { %341 = vst [vmem:[%s1180_s23 + $0x16] sm:$0x3] %v325_v38  ;;  %v604_v38 = vmul.f32 %v588_v12, %v1164_v51  ;;  %857 = vrcp.f32 %v1259_v44  ;;  %v510_v7 = vmul.f32 %v850_v53, %v1224_v0  ;;  %v1285_v25 = vmax.f32 %v469_v20, 1.0  ;;  %v355_v12 = vld [vmem:[#allocation2 + $0x16] sm:$0x3] }
  0x52   : > { %342 = vst [vmem:[%s1180_s23 + $0x18] sm:$0x3] %v1201_v16  ;;  %v525_v50 = vsub.f32 2.0, %v509_v45  ;;  %v852_v16 = vpop.eup %851  ;;  %v612_v32 = vmul.f32 %v596_v47, %v1183_v57  ;;  %859 = vrcp.f32 %v1266_v11  ;;  %v1289_v34 = vadd.f32 %v386_v36, %v369_v10 }
  0x53   : > { %343 = vst [vmem:[%s1180_s23 + $0x1a] sm:$0x3] %v1207_v17  ;;  %v854_v51 = vpop.eup %853  ;;  %v620_v17 = vsub.f32 %v1007_v19, %v604_v38  ;;  %v511_v37 = vmul.f32 %v852_v16, %v1230_v24  ;;  %v526_v57 = vsub.f32 2.0, %v510_v7  ;;  %861 = vrcp.f32 %v1285_v25 }
  0x54   : > { %344 = vst [vmem:[%s1180_s23 + $0x1c] sm:$0x3] %v328_v52  ;;  %v541_v54 = vmul.f32 %v848_v5, %v525_v50  ;;  %v628_v23 = vsub.f32 %v1029_v33, %v612_v32  ;;  %v512_v52 = vmul.f32 %v854_v51, %v1237_v49  ;;  %v1302_v7 = vadd.f32 %v355_v12, %v1045_v40  ;;  %v1430_v12 = vld [vmem:[#allocation4_spill] sm:$0xff] }
  0x55   : > { %345 = vst [vmem:[%s1180_s23 + $0x1e] sm:$0x3] %v329_v31  ;;  %v636_v42 = vmul.f32 %v620_v17, %v942_v1  ;;  %v527_v62 = vsub.f32 2.0, %v511_v37  ;;  %v542_v48 = vmul.f32 %v850_v53, %v526_v57 }
  0x56   : > { %v557_v59 = vmul.f32 %v541_v54, %v1210_v39  ;;  %v856_v19 = vpop.eup %855  ;;  %v644_v31 = vmul.f32 %v628_v23, %v968_v8  ;;  %v528_v5 = vsub.f32 2.0, %v512_v52 }
  0x57   : > { %v858_v33 = vpop.eup %857  ;;  %v652_v9 = vadd.f32 %v636_v42, %v604_v38  ;;  %v543_v30 = vmul.f32 %v852_v16, %v527_v62  ;;  %v513_v1 = vmul.f32 %v856_v19, %v1253_v6  ;;  %v558_v63 = vmul.f32 %v542_v48, %v1224_v0 }
  0x58   : > { %v573_v41 = vsub.f32 2.0, %v557_v59  ;;  %v860_v39 = vpop.eup %859  ;;  %v660_v45 = vadd.f32 %v644_v31, %v612_v32  ;;  %v544_v47 = vmul.f32 %v854_v51, %v528_v5  ;;  %v514_v4 = vmul.f32 %v858_v33, %v1259_v44  ;;  %v454_v51 = vld [vmem:[#allocation3 + $0x1c] sm:$0x3] }
  0x59   : > { %797 = vst [vmem:[%s1180_s23 + $0x20] sm:$0x3] %v652_v9  ;;  %v559_v53 = vmul.f32 %v543_v30, %v1230_v24  ;;  %v529_v50 = vsub.f32 2.0, %v513_v1  ;;  %v515_v10 = vmul.f32 %v860_v39, %v1266_v11  ;;  %v574_v38 = vsub.f32 2.0, %v558_v63  ;;  %v862_v17 = vpop.eup %861  ;;  %v1431_v63 = vld [vmem:[#allocation5_spill] sm:$0xff] }
  0x5a   : > { %v589_v8 = vmul.f32 %v573_v41, %v541_v54  ;;  %805 = vst [vmem:[%s1180_s23 + $0x30] sm:$0x3] %v660_v45  ;;  %v560_v35 = vmul.f32 %v544_v47, %v1237_v49  ;;  %v530_v16 = vsub.f32 2.0, %v514_v4  ;;  %v470_v23 = vadd.f32 %v454_v51, %v1090_v60  ;;  %v455_v51 = vld [vmem:[#allocation3 + $0x1e] sm:$0x3] }
  0x5b   : > { %v575_v32 = vsub.f32 2.0, %v559_v53  ;;  %v545_v36 = vmul.f32 %v856_v19, %v529_v50  ;;  %v531_v20 = vsub.f32 2.0, %v515_v10  ;;  %v590_v54 = vmul.f32 %v574_v38, %v542_v48  ;;  %v425_v38 = vld [vmem:[#allocation3 + $0x20] sm:$0x3] }
  0x5c   : > { %v605_v0 = vmul.f32 %v589_v8, %v1215_v55  ;;  %v576_v24 = vsub.f32 2.0, %v560_v35  ;;  %v546_v37 = vmul.f32 %v858_v33, %v530_v16  ;;  %v517_v19 = vmul.f32 %v862_v17, %v1285_v25  ;;  %v424_v8 = vld [vmem:[#allocation3 + $0x1e] sm:$0x3] }
  0x5d   : > { %v591_v52 = vmul.f32 %v575_v32, %v543_v30  ;;  %v561_v49 = vmul.f32 %v545_v36, %v1253_v6  ;;  %v547_v42 = vmul.f32 %v860_v39, %v531_v20  ;;  %v606_v59 = vmul.f32 %v590_v54, %v1220_v58  ;;  %v426_v54 = vld [vmem:[#allocation3 + $0x22] sm:$0x3] }
  0x5e   : > { %v621_v57 = vsub.f32 %v1011_v21, %v605_v0  ;;  %v592_v62 = vmul.f32 %v576_v24, %v544_v47  ;;  %v562_v55 = vmul.f32 %v546_v37, %v1259_v44  ;;  %v1429_v21 = vld [vmem:[#allocation15_spill] sm:$0xff]  ;;  %v533_v41 = vsub.f32 2.0, %v517_v19  ;;  %v1438_v19 = vld [vmem:[#allocation14_spill] sm:$0xff] }
  0x5f   : > { %v607_v48 = vmul.f32 %v591_v52, %v1246_v61  ;;  %v577_v5 = vsub.f32 2.0, %v561_v49  ;;  %v563_v60 = vmul.f32 %v547_v42, %v1266_v11  ;;  %v622_v33 = vsub.f32 %v1429_v21, %v606_v59 }
  0x60   : > { %v637_v31 = vmul.f32 %v621_v57, %v945_v2  ;;  %v608_v6 = vmul.f32 %v592_v62, %v1251_v15  ;;  %v578_v9 = vsub.f32 2.0, %v562_v55  ;;  %v549_v61 = vmul.f32 %v862_v17, %v533_v41  ;;  %v1433_v17 = vld [vmem:[#allocation13_spill] sm:$0xff]  ;;  %v1436_v57 = vld [vmem:[#allocation8_spill] sm:$0xff] }
  0x61   : > { %v623_v30 = vsub.f32 %v1019_v26, %v607_v48  ;;  %v593_v44 = vmul.f32 %v577_v5, %v545_v36  ;;  %v579_v1 = vsub.f32 2.0, %v563_v60  ;;  %v638_v39 = vmul.f32 %v622_v33, %v1430_v12  ;;  %v1432_v26 = vld [vmem:[#allocation6_spill] sm:$0xff]  ;;  %v457_v33 = vld [vmem:[#allocation3 + $0x22] sm:$0x3] }
  0x62   : > { %v653_v58 = vadd.f32 %v637_v31, %v605_v0  ;;  %v624_v2 = vsub.f32 %v1023_v28, %v608_v6  ;;  %v594_v45 = vmul.f32 %v578_v9, %v546_v37  ;;  %v1322_v4 = vmax.f32 %v470_v23, 1.0  ;;  %v1435_v37 = vld [vmem:[#allocation19_spill] sm:$0xff] }
  0x63   : > { %v639_v11 = vmul.f32 %v623_v30, %v1431_v63  ;;  %v609_v47 = vmul.f32 %v593_v44, %v1263_v3  ;;  %v595_v15 = vmul.f32 %v579_v1, %v547_v42  ;;  %v654_v53 = vadd.f32 %v638_v39, %v606_v59  ;;  %v388_v3 = vld [vmem:[#allocation2 + $0x1a] sm:$0x3]  ;;  %v1437_v42 = vld [vmem:[#allocation20_spill] sm:$0xff]  ;;  %v356_v63 = vld [vmem:[#allocation2 + $0x18] sm:$0x3] }
  0x64   : > { %798 = vst [vmem:[%s1180_s23 + $0x22] sm:$0x3] %v653_v58  ;;  %v640_v50 = vmul.f32 %v624_v2, %v1432_v26  ;;  %v610_v10 = vmul.f32 %v594_v45, %v1281_v13  ;;  %v565_v28 = vmul.f32 %v549_v61, %v1285_v25  ;;  %863 = vrcp.f32 %v1322_v4  ;;  %v1434_v25 = vld [vmem:[#allocation7_spill] sm:$0xff]  ;;  %v1439_v39 = vld [vmem:[#allocation9_spill] sm:$0xff]  ;;  %v1440_v26 = vld [vmem:[#allocation16_spill] sm:$0xff] }
  0x65   : > { %v655_v35 = vadd.f32 %v639_v11, %v607_v48  ;;  %v625_v16 = vsub.f32 %v1052_v43, %v609_v47  ;;  %v611_v0 = vmul.f32 %v595_v15, %v1289_v34  ;;  %799 = vst [vmem:[%s1180_s23 + $0x24] sm:$0x3] %v654_v53  ;;  %v440_v13 = vadd.f32 %v424_v8, %v1433_v17  ;;  %v456_v34 = vld [vmem:[#allocation3 + $0x20] sm:$0x3]  ;;  %v459_v58 = vld [vmem:[#allocation3 + $0x26] sm:$0x3] }
  0x66   : > { %v656_v32 = vadd.f32 %v640_v50, %v608_v6  ;;  %v626_v36 = vsub.f32 %v1105_v27, %v610_v10  ;;  %v581_v20 = vsub.f32 2.0, %v565_v28  ;;  %v471_v23 = vadd.f32 %v455_v51, %v1435_v37  ;;  %v458_v6 = vld [vmem:[#allocation3 + $0x24] sm:$0x3]  ;;  %v357_v28 = vld [vmem:[#allocation2 + $0x1a] sm:$0x3] }
  0x67   : > { %800 = vst [vmem:[%s1180_s23 + $0x26] sm:$0x3] %v655_v35  ;;  %v641_v24 = vmul.f32 %v625_v16, %v1434_v25  ;;  %v627_v43 = vsub.f32 %v1114_v29, %v611_v0  ;;  %v404_v49 = vadd.f32 %v388_v3, %v1302_v7  ;;  %v472_v59 = vadd.f32 %v456_v34, %v1437_v42  ;;  %v389_v35 = vld [vmem:[#allocation2 + $0x1c] sm:$0x3]  ;;  %v390_v25 = vld [vmem:[#allocation2 + $0x1e] sm:$0x3] }
  0x68   : > { %801 = vst [vmem:[%s1180_s23 + $0x28] sm:$0x3] %v656_v32  ;;  %v642_v52 = vmul.f32 %v626_v36, %v1436_v57  ;;  %v597_v27 = vmul.f32 %v581_v20, %v549_v61  ;;  %v441_v62 = vadd.f32 %v425_v38, %v997_v14  ;;  %v487_v48 = vmax.f32 %v471_v23, 1.0  ;;  %v1441_v36 = vld [vmem:[#allocation17_spill] sm:$0xff]  ;;  %v360_v42 = vld [vmem:[#allocation2 + $0x20] sm:$0x3] }
  0x69   : > { %v657_v55 = vadd.f32 %v641_v24, %v609_v47  ;;  %v643_v31 = vmul.f32 %v627_v43, %v1438_v19  ;;  %v442_v29 = vadd.f32 %v426_v54, %v1004_v18  ;;  %v488_v21 = vmax.f32 %v472_v59, 1.0  ;;  %v358_v43 = vld [vmem:[#allocation2 + $0x1c] sm:$0x3] }
  0x6a   : > { %v658_v5 = vadd.f32 %v642_v52, %v610_v10  ;;  %v613_v60 = vmul.f32 %v597_v27, %v404_v49  ;;  %v864_v9 = vpop.eup %863  ;;  %865 = vrcp.f32 %v487_v48  ;;  %v473_v41 = vadd.f32 %v457_v33, %v440_v13  ;;  %v359_v49 = vld [vmem:[#allocation2 + $0x1e] sm:$0x3]  ;;  %v391_v33 = vld [vmem:[#allocation2 + $0x20] sm:$0x3] }
  0x6b   : > { %802 = vst [vmem:[%s1180_s23 + $0x2a] sm:$0x3] %v657_v55  ;;  %v659_v7 = vadd.f32 %v643_v31, %v611_v0  ;;  %v518_v44 = vmul.f32 %v864_v9, %v1322_v4  ;;  %867 = vrcp.f32 %v488_v21  ;;  %v474_v12 = vadd.f32 %v458_v6, %v441_v62  ;;  %v1442_v55 = vld [vmem:[#allocation18_spill] sm:$0xff] }
  0x6c   : > { %803 = vst [vmem:[%s1180_s23 + $0x2c] sm:$0x3] %v658_v5  ;;  %v629_v30 = vsub.f32 %v1045_v40, %v613_v60  ;;  %v489_v1 = vmax.f32 %v473_v41, 1.0  ;;  %v475_v61 = vadd.f32 %v459_v58, %v442_v29  ;;  %v372_v50 = vadd.f32 %v356_v63, %v1440_v26 }
  0x6d   : > { %804 = vst [vmem:[%s1180_s23 + $0x2e] sm:$0x3] %v659_v7  ;;  %v534_v45 = vsub.f32 2.0, %v518_v44  ;;  %v490_v11 = vmax.f32 %v474_v12, 1.0  ;;  %v373_v20 = vadd.f32 %v357_v28, %v1441_v36  ;;  %v374_v19 = vadd.f32 %v358_v43, %v1442_v55  ;;  %v361_v7 = vld [vmem:[#allocation2 + $0x22] sm:$0x3] }
  0x6e   : > { %v645_v2 = vmul.f32 %v629_v30, %v1439_v39  ;;  %869 = vrcp.f32 %v489_v1  ;;  %v1350_v8 = vmax.f32 %v475_v61, 1.0  ;;  %v405_v13 = vadd.f32 %v389_v35, %v372_v50  ;;  %v1443_v44 = vld [vmem:[#allocation10_spill] sm:$0xff]  ;;  %v1445_v43 = vld [vmem:[#allocation12_spill] sm:$0xff] }
  0x6f   : > { %v550_v15 = vmul.f32 %v864_v9, %v534_v45  ;;  %871 = vrcp.f32 %v490_v11  ;;  %v406_v62 = vadd.f32 %v390_v25, %v373_v20  ;;  %v376_v58 = vadd.f32 %v360_v42, %v1139_v56  ;;  %v394_v28 = vld [vmem:[#allocation2 + $0x26] sm:$0x3] }
  0x70   : > { %v661_v47 = vadd.f32 %v645_v2, %v613_v60  ;;  %v866_v53 = vpop.eup %865  ;;  %873 = vrcp.f32 %v1350_v8  ;;  %v392_v2 = vld [vmem:[#allocation2 + $0x22] sm:$0x3]  ;;  %v407_v61 = vadd.f32 %v391_v33, %v374_v19 }
  0x71   : > { %v868_v40 = vpop.eup %867  ;;  %v566_v10 = vmul.f32 %v550_v15, %v1322_v4  ;;  %v519_v38 = vmul.f32 %v866_v53, %v487_v48 }
  0x72   : > { %806 = vst [vmem:[%s1180_s23 + $0x32] sm:$0x3] %v661_v47  ;;  %v520_v16 = vmul.f32 %v868_v40, %v488_v21  ;;  %v393_v47 = vld [vmem:[#allocation2 + $0x24] sm:$0x3] }
  0x73   : > { %v582_v0 = vsub.f32 2.0, %v566_v10  ;;  %v535_v3 = vsub.f32 2.0, %v519_v38 }
  0x74   : > { %v870_v32 = vpop.eup %869  ;;  %v536_v51 = vsub.f32 2.0, %v520_v16 }
  0x75   : > { %v598_v54 = vmul.f32 %v582_v0, %v550_v15  ;;  %v551_v24 = vmul.f32 %v866_v53, %v535_v3  ;;  %v521_v37 = vmul.f32 %v870_v32, %v489_v1  ;;  %v872_v23 = vpop.eup %871  ;;  %v377_v15 = vadd.f32 %v361_v7, %v1156_v22 }
  0x76   : > { %v552_v4 = vmul.f32 %v868_v40, %v536_v51  ;;  %v874_v34 = vpop.eup %873  ;;  %v522_v59 = vmul.f32 %v872_v23, %v490_v11  ;;  %v409_v3 = vadd.f32 %v393_v47, %v376_v58 }
  0x77   : > { %v614_v57 = vmul.f32 %v598_v54, %v405_v13  ;;  %v567_v52 = vmul.f32 %v551_v24, %v487_v48  ;;  %v537_v27 = vsub.f32 2.0, %v521_v37  ;;  %v523_v29 = vmul.f32 %v874_v34, %v1350_v8  ;;  %v1444_v54 = vld [vmem:[#allocation11_spill] sm:$0xff] }
  0x78   : > { %v568_v31 = vmul.f32 %v552_v4, %v488_v21  ;;  %v538_v9 = vsub.f32 2.0, %v522_v59  ;;  %v375_v48 = vadd.f32 %v359_v49, %v1126_v46  ;;  %v410_v51 = vadd.f32 %v394_v28, %v377_v15 }
  0x79   : > { %v630_v5 = vsub.f32 %v1440_v26, %v614_v57  ;;  %v583_v60 = vsub.f32 2.0, %v567_v52  ;;  %v553_v6 = vmul.f32 %v870_v32, %v537_v27  ;;  %v539_v30 = vsub.f32 2.0, %v523_v29 }
  0x7a   : > { %v584_v41 = vsub.f32 2.0, %v568_v31  ;;  %v554_v45 = vmul.f32 %v872_v23, %v538_v9  ;;  %v408_v35 = vadd.f32 %v392_v2, %v375_v48 }
  0x7b   : > { %v646_v12 = vmul.f32 %v630_v5, %v1443_v44  ;;  %v599_v39 = vmul.f32 %v583_v60, %v551_v24  ;;  %v569_v21 = vmul.f32 %v553_v6, %v489_v1  ;;  %v555_v53 = vmul.f32 %v874_v34, %v539_v30 }
  0x7c   : > { %v600_v63 = vmul.f32 %v584_v41, %v552_v4  ;;  %v570_v10 = vmul.f32 %v554_v45, %v490_v11 }
  0x7d   : > { %v662_v40 = vadd.f32 %v646_v12, %v614_v57  ;;  %v615_v26 = vmul.f32 %v599_v39, %v406_v62  ;;  %v585_v50 = vsub.f32 2.0, %v569_v21  ;;  %v571_v16 = vmul.f32 %v555_v53, %v1350_v8 }
  0x7e   : > { %v616_v38 = vmul.f32 %v600_v63, %v407_v61  ;;  %v586_v32 = vsub.f32 2.0, %v570_v10 }
  0x7f   : > { %807 = vst [vmem:[%s1180_s23 + $0x34] sm:$0x3] %v662_v40  ;;  %v631_v0 = vsub.f32 %v1441_v36, %v615_v26  ;;  %v601_v1 = vmul.f32 %v585_v50, %v553_v6  ;;  %v587_v13 = vsub.f32 2.0, %v571_v16 }
  0x80   : > { %v632_v20 = vsub.f32 %v1442_v55, %v616_v38  ;;  %v602_v24 = vmul.f32 %v586_v32, %v554_v45 }
  0x81   : > { %v647_v25 = vmul.f32 %v631_v0, %v1444_v54  ;;  %v617_v11 = vmul.f32 %v601_v1, %v408_v35  ;;  %v603_v8 = vmul.f32 %v587_v13, %v555_v53 }
  0x82   : > { %v648_v37 = vmul.f32 %v632_v20, %v1445_v43  ;;  %v618_v4 = vmul.f32 %v602_v24, %v409_v3 }
  0x83   : > { %v663_v23 = vadd.f32 %v647_v25, %v615_v26  ;;  %v633_v36 = vsub.f32 %v1126_v46, %v617_v11  ;;  %v619_v57 = vmul.f32 %v603_v8, %v410_v51 }
  0x84   : > { %v664_v34 = vadd.f32 %v648_v37, %v616_v38  ;;  %v634_v49 = vsub.f32 %v1139_v56, %v618_v4 }
  0x85   : > { %808 = vst [vmem:[%s1180_s23 + $0x36] sm:$0x3] %v663_v23  ;;  %v649_v52 = vmul.f32 %v633_v36, %v1433_v17  ;;  %v635_v27 = vsub.f32 %v1156_v22, %v619_v57 }
  0x86   : > { %809 = vst [vmem:[%s1180_s23 + $0x38] sm:$0x3] %v664_v34  ;;  %v650_v59 = vmul.f32 %v634_v49, %v997_v14 }
  0x87   : > { %v665_v42 = vadd.f32 %v649_v52, %v617_v11  ;;  %v651_v62 = vmul.f32 %v635_v27, %v1004_v18 }
  0x88   : > { %v666_v55 = vadd.f32 %v650_v59, %v618_v4 }
  0x89   : > { %810 = vst [vmem:[%s1180_s23 + $0x3a] sm:$0x3] %v665_v42  ;;  %v667_v46 = vadd.f32 %v651_v62, %v619_v57 }
  0x8a   : > { %811 = vst [vmem:[%s1180_s23 + $0x3c] sm:$0x3] %v666_v55 }
  0x8b   : > { %812 = vst [vmem:[%s1180_s23 + $0x3e] sm:$0x3] %v667_v46 }
  0x8c PF: > { %s12_s11 = sadd.s32 1, %s897_s11   ;;  %s1446_s9 = smov %s893_s10 }
  0x8d   : > { %p9_p5 = scmp.ge.s32.totalorder %s12_s11, 4   ;;  %s1447_s10 = smov %s1449_s12 }
  0x8f   :  { %11 = sbr.rel (!%p9_p5) target bundleno = 2 (0x2), region = 68 }

</bundles_post_ra>
